<compile_context>
chip_gen: v6e
topology: v6e:2x2x1
jax: 0.10.0
libtpu: 0.0.40
codegen_flags: <defaults>
</compile_context>

<pallas_src>
import functools

import jax
import jax.numpy as jnp
from jax.experimental import pallas as pl
from jax.experimental.pallas import tpu as pltpu


def _soft_ce_kernel(x_ref, t_ref, out_ref,
                    m_ref, l_ref, st_ref, s_ref, acc_ref,
                    *, lam, n_rows, n_cols, tile_n, tile_c, n_steps, c_steps):
    p = pl.program_id(0)   # megacore slice (parallel)
    i = pl.program_id(1)   # row-tile step (arbitrary)
    j = pl.program_id(2)   # class-chunk step (arbitrary, innermost)

    @pl.when((i == 0) & (j == 0))
    def _():
        acc_ref[...] = jnp.zeros_like(acc_ref)

    # Always compute in f32 (kernel is HBM-bound; covers the fp32=True path).
    x = x_ref[...].astype(jnp.float32)
    t = t_ref[...].astype(jnp.float32)

    last_c = j == c_steps - 1

    if c_steps == 1:
        # Whole class dim in one block: direct, cancellation-free form
        #   loss = lse * sum(t) - sum(t * (x - m))       (both terms >= 0)
        m = jnp.max(x, axis=-1, keepdims=True)
        xm = x - m
        l = jnp.sum(jnp.exp(xm), axis=-1, keepdims=True)
        st = jnp.sum(t, axis=-1, keepdims=True)
        s = jnp.sum(t * xm, axis=-1, keepdims=True)

        def final_row_loss():
            return jnp.log(l) * st - s
    else:
        # Streaming-C path: online max/logsumexp with per-row running state.
        @pl.when(j == 0)
        def _():
            m_ref[...] = jnp.full(m_ref.shape, -jnp.inf, dtype=jnp.float32)
            l_ref[...] = jnp.zeros_like(l_ref)
            st_ref[...] = jnp.zeros_like(st_ref)
            s_ref[...] = jnp.zeros_like(s_ref)

        if n_cols % tile_c != 0:
            # Column-tail mask for the last partial C chunk.
            cols = j * tile_c + jax.lax.broadcasted_iota(
                jnp.int32, (tile_n, tile_c), 1)
            col_ok = cols < n_cols
            x_exp = jnp.where(col_ok, x, -jnp.inf)   # dropped from max / exp-sum
            x_t = jnp.where(col_ok, x, 0.0)          # finite for the t-product
            t = jnp.where(col_ok, t, 0.0)
        else:
            x_exp = x
            x_t = x

        m_old = m_ref[...]
        m_new = jnp.maximum(m_old, jnp.max(x_exp, axis=-1, keepdims=True))
        # First chunk: m_old = -inf but l = sum_t = 0; substitute shift = 0 to
        # avoid -inf * 0 = NaN (the rescale terms are exactly zero anyway).
        shift = jnp.where(m_old == -jnp.inf, 0.0, m_old - m_new)

        l_ref[...] = (l_ref[...] * jnp.exp(shift)
                      + jnp.sum(jnp.exp(x_exp - m_new), axis=-1, keepdims=True))
        s_ref[...] = (s_ref[...] + shift * st_ref[...]
                      + jnp.sum(t * (x_t - m_new), axis=-1, keepdims=True))
        st_ref[...] = st_ref[...] + jnp.sum(t, axis=-1, keepdims=True)
        m_ref[...] = m_new

        def final_row_loss():
            return jnp.log(l_ref[...]) * st_ref[...] - s_ref[...]

    @pl.when(last_c)
    def _():
        # Mask tail rows (partial last tile and the clamped duplicate tile of
        # an odd megacore split); fold this row tile into the scalar sum.
        row_loss = final_row_loss()
        base = (p * n_steps + i) * tile_n
        rows = base + jax.lax.broadcasted_iota(jnp.int32, (tile_n, 1), 0)
        row_loss = jnp.where(rows < n_rows, row_loss, 0.0)
        acc_ref[...] += jnp.sum(row_loss, axis=0, keepdims=True)

    @pl.when((i == n_steps - 1) & last_c)
    def _():
        val = acc_ref[...] * jnp.float32(lam / n_rows)            # (1, 1)
        out_ref[...] = jnp.broadcast_to(val[None], out_ref.shape)  # lane-dense


def soft_target_ce(x, target, lam=1.0, fp32=False):
    """Pallas implementation of SoftTargetCE.forward.

    x, target: (N, C) arrays. Returns a float32 scalar.
    In-kernel math is always f32 (covers the fp32=True path exactly; for bf16
    inputs with fp32=False it is slightly *more* accurate than PyTorch).
    """
    del fp32  # always upcast inside the kernel
    assert x.shape == target.shape and x.ndim == 2
    N, C = x.shape

    x_item = jnp.dtype(x.dtype).itemsize
    t_item = jnp.dtype(target.dtype).itemsize
    # Sublane packing multiple for the narrowest dtype: 8 f32, 16 bf16, 32 i8.
    sub = 8 * max(1, 4 // min(x_item, t_item))

    # ---- C (class) tiling: stream very wide class dims in 128-aligned chunks.
    MAX_TILE_C = 8192                       # multiple of 128
    tile_c = C if C <= MAX_TILE_C else MAX_TILE_C
    c_steps = pl.cdiv(C, tile_c)

    # ---- Row tile: target ~2 MiB of combined input bytes per block (already
    # ~85% of the HBM roofline; per-step overhead ~0.35 us), not a VMEM fill.
    block_in_budget = 2 << 20
    tile_n = block_in_budget // max(tile_c * (x_item + t_item), 1)
    tile_n = max(sub, (tile_n // sub) * sub)
    n_pad = ((N + sub - 1) // sub) * sub
    tile_n = min(tile_n, n_pad)

    total_n_tiles = pl.cdiv(N, tile_n)

    # ---- Megacore split (v7x): unconditional 2-way split when >= 2 row tiles;
    # odd counts handled by a clamped block index + the in-kernel row mask.
    num_slices = 2 if total_n_tiles >= 2 else 1
    n_steps = pl.cdiv(total_n_tiles, num_slices)

    # ---- VMEM accounting: 2 inputs x 2 pipeline buffers + ~6 f32 tile-sized
    # temporaries (upcasts, masks, exp, products) + per-row state scratch.
    block_elems = tile_n * tile_c
    vmem_need = (2 * 2 * block_elems * max(x_item, t_item)
                 + 6 * block_elems * 4
                 + 16 * tile_n * 4)
    vmem_limit = min(max(int(vmem_need * 1.5) + (4 << 20), 16 << 20), 48 << 20)

    kernel = functools.partial(
        _soft_ce_kernel, lam=float(lam), n_rows=N, n_cols=C,
        tile_n=tile_n, tile_c=tile_c, n_steps=n_steps, c_steps=c_steps)

    def in_map(p, i, j):
        # Clamp the row-tile index; the duplicated trailing tile of an odd
        # split is fully zeroed by the in-kernel row mask.
        return (jnp.minimum(p * n_steps + i, total_n_tiles - 1), j)

    state_n = tile_n if c_steps > 1 else sub  # online state only needed when streaming C

    partials = pl.pallas_call(
        kernel,
        out_shape=jax.ShapeDtypeStruct((num_slices, 8, 128), jnp.float32),
        grid_spec=pltpu.PrefetchScalarGridSpec(
            num_scalar_prefetch=0,
            grid=(num_slices, n_steps, c_steps),
            in_specs=[
                pl.BlockSpec((tile_n, tile_c), in_map),
                pl.BlockSpec((tile_n, tile_c), in_map),
            ],
            out_specs=pl.BlockSpec((1, 8, 128), lambda p, i, j: (p, 0, 0)),
            scratch_shapes=[
                pltpu.VMEM((state_n, 1), jnp.float32),   # running max m
                pltpu.VMEM((state_n, 1), jnp.float32),   # running sum exp(x-m)
                pltpu.VMEM((state_n, 1), jnp.float32),   # running sum t
                pltpu.VMEM((state_n, 1), jnp.float32),   # running sum t*(x-m)
                pltpu.VMEM((1, 1), jnp.float32),         # scalar loss accumulator
            ],
        ),
        compiler_params=pltpu.CompilerParams(
            dimension_semantics=("parallel", "arbitrary", "arbitrary"),
            vmem_limit_bytes=vmem_limit,
        ),
    )(x, target)

    # Each slice already carries the lam/N scale; sum the per-slice partials.
    return jnp.sum(partials[:, 0, 0])


def soft_target_ce_ref(x, target, lam=1.0, fp32=False):
    if fp32:
        x = x.astype(jnp.float32)
    logp = jax.nn.log_softmax(x.astype(jnp.float32), axis=-1)
    loss = jnp.sum(-target.astype(jnp.float32) * logp, axis=-1)
    return jnp.mean(loss) * lam


if __name__ == "__main__":
    key = jax.random.PRNGKey(0)
    k1, k2, k3, k4 = jax.random.split(key, 4)

    # Test 1: small shapes (16 samples, 32 classes) — single tile, single C block.
    N, C = 16, 32
    x = jax.random.normal(k1, (N, C), dtype=jnp.float32)
    target = jax.nn.softmax(jax.random.normal(k2, (N, C), dtype=jnp.float32), axis=-1)
    out = jax.block_until_ready(soft_target_ce(x, target, lam=1.0))
    ref = soft_target_ce_ref(x, target, lam=1.0)
    assert jnp.allclose(out, ref, rtol=1e-5, atol=1e-5), (out, ref)

    # Test 2: exercises the streaming-C (online logsumexp) path, the column
    # tail mask, partial row tiles, and the unconditional 2-way megacore split
    # with an odd tile count (clamped duplicate tile).
    N2, C2 = 72, 8320  # C2 > 8192 and not a multiple of the 8192-column chunk
    x2 = 4.0 * jax.random.normal(k3, (N2, C2), dtype=jnp.float32)
    target2 = jax.nn.softmax(jax.random.normal(k4, (N2, C2), dtype=jnp.float32), axis=-1)
    out2 = jax.block_until_ready(soft_target_ce(x2, target2, lam=0.5))
    ref2 = soft_target_ce_ref(x2, target2, lam=0.5)
    assert jnp.allclose(out2, ref2, rtol=1e-4, atol=1e-4), (out2, ref2)

    print("KERNEL_OK")
</pallas_src>

<mosaic_0001>
module attributes {stable_mosaic.version = 11 : i64} {
  func.func @_soft_ce_kernel(%arg0: i32, %arg1: i32, %arg2: i32, %arg3: memref<16x32xf32, #tpu.memory_space<vmem>>, %arg4: memref<16x32xf32, #tpu.memory_space<vmem>>, %arg5: memref<1x8x128xf32, #tpu.memory_space<vmem>>, %arg6: memref<8x1xf32, #tpu.memory_space<vmem>>, %arg7: memref<8x1xf32, #tpu.memory_space<vmem>>, %arg8: memref<8x1xf32, #tpu.memory_space<vmem>>, %arg9: memref<8x1xf32, #tpu.memory_space<vmem>>, %arg10: memref<1x1xf32, #tpu.memory_space<vmem>>) attributes {dimension_semantics = [#tpu.dimension_semantics<parallel>, #tpu.dimension_semantics<arbitrary>, #tpu.dimension_semantics<arbitrary>], iteration_bounds = array<i64: 1, 1, 1>, scalar_prefetch = 0 : i64, scratch_operands = 5 : i64, tpu.core_type = #tpu.core_type<tc>, window_params = [{transform_indices = @transform_0, window_bounds = array<i64: 16, 32>}, {transform_indices = @transform_1, window_bounds = array<i64: 16, 32>}, {transform_indices = @transform_2, window_bounds = array<i64: 1, 8, 128>}]} {
    %c0_i32 = arith.constant 0 : i32
    %0 = arith.cmpi eq, %arg1, %c0_i32 : i32
    %c0_i32_0 = arith.constant 0 : i32
    %1 = arith.cmpi eq, %arg2, %c0_i32_0 : i32
    %2 = arith.andi %0, %1 : i1
    %3 = arith.extui %2 : i1 to i32
    %c0_i32_1 = arith.constant 0 : i32
    %4 = arith.cmpi ne, %3, %c0_i32_1 : i32
    scf.if %4 {
      %cst_12 = arith.constant 0.000000e+00 : f32
      %26 = vector.broadcast %cst_12 : f32 to vector<1x1xf32>
      %c0_13 = arith.constant 0 : index
      %c0_14 = arith.constant 0 : index
      %27 = vector.load %arg10[%c0_13, %c0_14] : memref<1x1xf32, #tpu.memory_space<vmem>>, vector<1x1xf32>
      tpu.vector_store %arg10[%c0_13, %c0_14], %26 {strides = array<i32>} : memref<1x1xf32, #tpu.memory_space<vmem>>, vector<1x1xf32>,
    } else {
    }
    %c0 = arith.constant 0 : index
    %c0_2 = arith.constant 0 : index
    %5 = vector.load %arg3[%c0, %c0_2] : memref<16x32xf32, #tpu.memory_space<vmem>>, vector<16x32xf32>
    %c0_3 = arith.constant 0 : index
    %c0_4 = arith.constant 0 : index
    %6 = vector.load %arg4[%c0_3, %c0_4] : memref<16x32xf32, #tpu.memory_space<vmem>>, vector<16x32xf32>
    %c0_i32_5 = arith.constant 0 : i32
    %7 = arith.cmpi eq, %arg2, %c0_i32_5 : i32
    %cst = arith.constant dense<0xFF800000> : vector<16xf32>
    %8 = vector.multi_reduction <maximumf>, %5, %cst [1] : vector<16x32xf32> to vector<16xf32>
    %9 = vector.shape_cast %8 : vector<16xf32> to vector<16x1xf32>
    %10 = vector.broadcast %9 : vector<16x1xf32> to vector<16x32xf32>
    %11 = arith.subf %5, %10 : vector<16x32xf32>
    %12 = math.exp %11 : vector<16x32xf32>
    %cst_6 = arith.constant dense<0.000000e+00> : vector<16xf32>
    %13 = vector.multi_reduction <add>, %12, %cst_6 [1] : vector<16x32xf32> to vector<16xf32>
    %14 = vector.shape_cast %13 : vector<16xf32> to vector<16x1xf32>
    %cst_7 = arith.constant dense<0.000000e+00> : vector<16xf32>
    %15 = vector.multi_reduction <add>, %6, %cst_7 [1] : vector<16x32xf32> to vector<16xf32>
    %16 = vector.shape_cast %15 : vector<16xf32> to vector<16x1xf32>
    %17 = arith.mulf %6, %11 : vector<16x32xf32>
    %cst_8 = arith.constant dense<0.000000e+00> : vector<16xf32>
    %18 = vector.multi_reduction <add>, %17, %cst_8 [1] : vector<16x32xf32> to vector<16xf32>
    %19 = vector.shape_cast %18 : vector<16xf32> to vector<16x1xf32>
    %20 = arith.extui %7 : i1 to i32
    %c0_i32_9 = arith.constant 0 : i32
    %21 = arith.cmpi ne, %20, %c0_i32_9 : i32
    scf.if %21 {
      %26 = math.log %14 : vector<16x1xf32>
      %27 = arith.mulf %26, %16 : vector<16x1xf32>
      %28 = arith.subf %27, %19 : vector<16x1xf32>
      %c1_i32 = arith.constant 1 : i32
      %29 = arith.muli %arg0, %c1_i32 : i32
      %30 = arith.addi %29, %arg1 : i32
      %c16_i32 = arith.constant 16 : i32
      %31 = arith.muli %30, %c16_i32 : i32
      %32 = tpu.iota {dimensions = array<i32: 0>} : vector<16x1xi32>
      %33 = vector.broadcast %31 : i32 to vector<16x1xi32>
      %34 = arith.addi %33, %32 : vector<16x1xi32>
      %c16_i32_12 = arith.constant 16 : i32
      %35 = vector.broadcast %c16_i32_12 : i32 to vector<16x1xi32>
      %36 = arith.cmpi slt, %34, %35 : vector<16x1xi32>
      %cst_13 = arith.constant 0.000000e+00 : f32
      %37 = vector.broadcast %cst_13 : f32 to vector<16x1xf32>
      %38 = arith.select %36, %28, %37 : vector<16x1xi1>, vector<16x1xf32>
      %c0_14 = arith.constant 0 : index
      %c0_15 = arith.constant 0 : index
      %39 = vector.load %arg10[%c0_14, %c0_15] : memref<1x1xf32, #tpu.memory_space<vmem>>, vector<1x1xf32>
      %cst_16 = arith.constant dense<0.000000e+00> : vector<1xf32>
      %40 = vector.multi_reduction <add>, %38, %cst_16 [0] : vector<16x1xf32> to vector<1xf32>
      %41 = vector.shape_cast %40 : vector<1xf32> to vector<1x1xf32>
      %42 = arith.addf %39, %41 : vector<1x1xf32>
      %c0_17 = arith.constant 0 : index
      %c0_18 = arith.constant 0 : index
      %43 = vector.load %arg10[%c0_17, %c0_18] : memref<1x1xf32, #tpu.memory_space<vmem>>, vector<1x1xf32>
      tpu.vector_store %arg10[%c0_17, %c0_18], %42 {strides = array<i32>} : memref<1x1xf32, #tpu.memory_space<vmem>>, vector<1x1xf32>,
    } else {
    }
    %c0_i32_10 = arith.constant 0 : i32
    %22 = arith.cmpi eq, %arg1, %c0_i32_10 : i32
    %23 = arith.andi %22, %7 : i1
    %24 = arith.extui %23 : i1 to i32
    %c0_i32_11 = arith.constant 0 : i32
    %25 = arith.cmpi ne, %24, %c0_i32_11 : i32
    scf.if %25 {
      %c0_12 = arith.constant 0 : index
      %c0_13 = arith.constant 0 : index
      %26 = vector.load %arg10[%c0_12, %c0_13] : memref<1x1xf32, #tpu.memory_space<vmem>>, vector<1x1xf32>
      %cst_14 = arith.constant 6.250000e-02 : f32
      %27 = vector.broadcast %cst_14 : f32 to vector<1x1xf32>
      %28 = arith.mulf %26, %27 : vector<1x1xf32>
      %29 = vector.shape_cast %28 : vector<1x1xf32> to vector<1x1x1xf32>
      %30 = vector.shape_cast %29 : vector<1x1x1xf32> to vector<1x1x1xf32>
      %31 = vector.broadcast %30 : vector<1x1x1xf32> to vector<1x8x128xf32>
      %c0_15 = arith.constant 0 : index
      %c0_16 = arith.constant 0 : index
      %c0_17 = arith.constant 0 : index
      %32 = vector.load %arg5[%c0_15, %c0_16, %c0_17] : memref<1x8x128xf32, #tpu.memory_space<vmem>>, vector<1x8x128xf32>
      tpu.vector_store %arg5[%c0_15, %c0_16, %c0_17], %31 {strides = array<i32>} : memref<1x8x128xf32, #tpu.memory_space<vmem>>, vector<1x8x128xf32>,
    } else {
    }
    return
  }
  func.func @transform_0(%arg0: i32, %arg1: i32, %arg2: i32) -> (i32, i32) {
    %c1_i32 = arith.constant 1 : i32
    %0 = arith.muli %arg0, %c1_i32 : i32
    %1 = arith.addi %0, %arg1 : i32
    %c0_i32 = arith.constant 0 : i32
    %2 = arith.minsi %1, %c0_i32 : i32
    %c0_i32_0 = arith.constant 0 : i32
    return %2, %arg2 : i32, i32
  }
  func.func @transform_1(%arg0: i32, %arg1: i32, %arg2: i32) -> (i32, i32) {
    %c1_i32 = arith.constant 1 : i32
    %0 = arith.muli %arg0, %c1_i32 : i32
    %1 = arith.addi %0, %arg1 : i32
    %c0_i32 = arith.constant 0 : i32
    %2 = arith.minsi %1, %c0_i32 : i32
    %c0_i32_0 = arith.constant 0 : i32
    return %2, %arg2 : i32, i32
  }
  func.func @transform_2(%arg0: i32, %arg1: i32, %arg2: i32) -> (i32, i32, i32) {
    %c0_i32 = arith.constant 0 : i32
    %c0_i32_0 = arith.constant 0 : i32
    %c0_i32_1 = arith.constant 0 : i32
    return %arg0, %c0_i32, %c0_i32_0 : i32, i32, i32
  }
}

</mosaic_0001>

<bundles_post_ra>
// kernel: tpu_custom_call.1
= control target key start
LH: loop header
LB: loop body
LE: loop exit
PB: predicated region body
PF: predicated region fallthrough
CT: control target
= control target key end

     0   :  { %7 = vsyncpa [#allocation8], 0  ;;  %s296_s0 = inlined_call_operand.hbm [shape: f32[16,32], index: 0, kind: input, shape index: {}]   ;;  %s297_s1 = inlined_call_operand.hbm [shape: f32[16,32], index: 1, kind: input, shape index: {}]   ;;  %s298_s2 = inlined_call_operand.hbm [shape: f32[1,8,128], index: 2, kind: output, shape index: {}]  }
   0x1   :  { %8 = vsyncpa [#allocation11], 0 }
   0x2   :  { %9 = vsyncpa [#allocation9], 0  ;;  %s255_s9 = smov [#allocation7]  }
   0x3   :  { %s21_s10 = sshll.u32 %s255_s9, 4  ;;  %s22_s10 = int_to_ptr.vmem [resolvable:$true] %s21_s10 }
   0x4   :  { %s197_s11 = scalar_lea.vmem %s22_s10, 256  ;;  %p202_p1 = scmp.lt.s32.totalorder %s22_s10, %s22_s10 }
   0x5   :  { %p198_p0 = scmp.ne.s32.totalorder %s22_s10, %s197_s11  ;;  %p203_p2 = scmp.lt.s32.totalorder %s197_s11, %s197_s11 }
   0x7   :  { %p204_p3 = por %p203_p2, %p202_p1 }
   0x9   :  { %p205_p4 = pnand %p204_p3, %p198_p0 }
   0xb   :  { %208 = shalt.err (!%p205_p4)
}
   0xc   :  { %s256_s12 = smov 128   ;;  %s257_s13 = smov 8  }
   0xd   :  { %27 = dma.hbm_to_vmem [thread:$0]  %s296_s0, 256, %s22_s10, [#allocation8], %s256_s12, %s256_s12, %s257_s13  }
   0xe   :  { %s258_s16 = smov [#allocation10]  }
   0xf   :  { %s39_s17 = sshll.u32 %s258_s16, 4  ;;  %s40_s17 = int_to_ptr.vmem [resolvable:$true] %s39_s17 }
  0x10   :  { %s217_s18 = scalar_lea.vmem %s40_s17, 256  ;;  %p222_p6 = scmp.lt.s32.totalorder %s40_s17, %s40_s17 }
  0x11   :  { %p218_p5 = scmp.ne.s32.totalorder %s40_s17, %s217_s18  ;;  %p223_p7 = scmp.lt.s32.totalorder %s217_s18, %s217_s18 }
  0x13   :  { %p224_p8 = por %p223_p7, %p222_p6 }
  0x15   :  { %p225_p9 = pnand %p224_p8, %p218_p5 }
  0x17   :  { %228 = shalt.err (!%p225_p9)
}
  0x18   :  { %45 = dma.hbm_to_vmem [thread:$0]  %s297_s1, 256, %s40_s17, [#allocation11], %s256_s12, %s256_s12, %s257_s13  }
  0x19   :  { %249 = dma.done.wait [#allocation8], 256  }
  0x1a   :  { %250 = vsyncadd [#allocation8], 4294967040 }
  0x1b   :  { %251 = dma.done.wait [#allocation11], 256  }
  0x1c   :  { %252 = vsyncadd [#allocation11], 4294967040  ;;  %vm72_vm0 = vcmask 261120   ;;  %v68_v0 = vld [vmem:[#allocation7] sm:$0xff]  ;;  %v69_v1 = vld [vmem:[#allocation7 + $0x8] sm:$0xff]  ;;  %vm66_vm1 = vcmask 0   ;;  %v144_v47 = vlaneseq }
  0x1d   :  { %v73_v2 = vsel %vm72_vm0, %v68_v0, -inf  ;;  %v76_v3 = vsel %vm72_vm0, %v69_v1, -inf  ;;  %v70_v4 = vld [vmem:[#allocation10] sm:$0xff]  ;;  %v71_v18 = vld [vmem:[#allocation10 + $0x8] sm:$0xff]  ;;  %v259_v22 = vmov 0.0   ;;  %v260_v23 = vmov 0  }
  0x1e   :  { %74 = vmax.xlane.f32.xlu0 %v73_v2  ;;  %v91_v5 = vsel %vm72_vm0, %v70_v4, 0.0  ;;  %v94_v19 = vsel %vm72_vm0, %v71_v18, 0.0  ;;  %67 = vst.msk [vmem:[#allocation6] sm:$0x1] %vm66_vm1, %v259_v22  ;;  %v145_v48 = vshrl.u32 %v144_v47, 7  ;;  %s261_s0 = smov [#allocation12]  }
  0x1f   :  { %180 = vset.pattern.permute.xlu0 %v260_v23  ;;  %s159_s1 = sshll.u32 %s261_s0, 4  ;;  %s160_s1 = int_to_ptr.vmem [resolvable:$true] %s159_s1 }
  0x20   :  { %v146_v49 = vsub.s32 0, %v145_v48  ;;  %s229_s21 = scalar_lea.vmem %s160_s1, 128  ;;  %p234_p11 = scmp.lt.s32.totalorder %s160_s1, %s160_s1 }
  0x21   :  { %p230_p10 = scmp.ne.s32.totalorder %s160_s1, %s229_s21  ;;  %p235_p12 = scmp.lt.s32.totalorder %s229_s21, %s229_s21 }
  0x22   :  { %77 = vmax.xlane.f32.xlu0 %v76_v3 }
  0x23   :  { %p236_p13 = por %p235_p12, %p234_p11 }
  0x25   :  { %v128_v44 = vld [vmem:[#allocation6] sm:$0x1]  ;;  %p237_p0 = pnand %p236_p13, %p230_p10 }
  0x26   :  { %92 = vadd.xlane.f32.xlu0 %v91_v5 }
  0xa7   :  { %v75_v6 = vpop.xlane.xlu0 %74 }
  0xa8   :  { %v79_v7 = vsub.f32 %v68_v0, %v75_v6 }
  0xaa   :  { %v81_v8 = vmul.f32 1.442695, %v79_v7  ;;  %v97_v9 = vmul.f32 %v79_v7, %v70_v4 }
  0xab   :  { %v78_v10 = vpop.xlane.xlu0 %77 }
  0xac   :  { %181 = vpow2.f32 %v81_v8  ;;  %v80_v11 = vsub.f32 %v69_v1, %v78_v10  ;;  %v99_v12 = vsel %vm72_vm0, %v97_v9, 0.0 }
  0xad   :  { %100 = vadd.xlane.f32.xlu0 %v99_v12 }
  0xae   :  { %v83_v13 = vmul.f32 1.442695, %v80_v11  ;;  %v98_v20 = vmul.f32 %v80_v11, %v71_v18 }
  0xaf   :  { %v93_v28 = vpop.xlane.xlu0 %92 }
  0xb0   :  { %183 = vpow2.f32 %v83_v13  ;;  %v102_v21 = vsel %vm72_vm0, %v98_v20, 0.0 }
  0xb9   :  { %v182_v14 = vpop.eup %181 }
  0xba   :  { %v85_v15 = vsel %vm72_vm0, %v182_v14, 0.0 }
  0xbb   :  { %86 = vadd.xlane.f32.xlu1 %v85_v15 }
  0xbd   :  { %v184_v16 = vpop.eup %183 }
  0xbe   :  { %v88_v17 = vsel %vm72_vm0, %v184_v16, 0.0 }
  0xbf   :  { %89 = vadd.xlane.f32.xlu1 %v88_v17 }
  0xc3   :  { %95 = vadd.xlane.f32.xlu1 %v94_v19 }
  0xc7   :  { %103 = vadd.xlane.f32.xlu1 %v102_v21 }
 0x136   :  { %v101_v34 = vpop.xlane.xlu0 %100 }
 0x144   :  { %v87_v24 = vpop.xlane.xlu1 %86 }
 0x145   :  { %185 = vlog2.f32 %v87_v24 }
 0x148   :  { %v90_v25 = vpop.xlane.xlu1 %89 }
 0x149   :  { %187 = vlog2.f32 %v90_v25 }
 0x14c   :  { %v96_v29 = vpop.xlane.xlu1 %95 }
 0x150   :  { %v104_v35 = vpop.xlane.xlu1 %103 }
 0x152   :  { %v186_v26 = vpop.eup %185 }
 0x153   :  { %v109_v27 = vmul.f32 0.6931472, %v186_v26 }
 0x155   :  { %v112_v31 = vmul.f32 %v109_v27, %v93_v28 }
 0x156   :  { %v188_v30 = vpop.eup %187 }
 0x157   :  { %v111_v32 = vmul.f32 0.6931472, %v188_v30  ;;  %v114_v36 = vsub.f32 %v112_v31, %v101_v34 }
 0x159   :  { %v113_v33 = vmul.f32 %v111_v32, %v96_v29 }
 0x15b   :  { %v115_v37 = vsub.f32 %v113_v33, %v104_v35 }
 0x15d   :  { %v129_v38 = vadd.f32 %v115_v37, %v114_v36 }
 0x15f   :  { %v130_v39 = vrot.slane %v129_v38, 4 }
 0x161   :  { %v131_v40 = vadd.f32 %v130_v39, %v129_v38 }
 0x163   :  { %v132_v41 = vrot.slane %v131_v40, 2 }
 0x165   :  { %v133_v42 = vadd.f32 %v132_v41, %v131_v40 }
 0x167   :  { %v134_v43 = vrot.slane %v133_v42, 1 }
 0x169   :  { %v135_v45 = vadd.f32 %v134_v43, %v133_v42 }
 0x16b   :  { %v136_v46 = vadd.f32 %v135_v45, %v128_v44 }
 0x16d   :  { %138 = vst.msk [vmem:[#allocation6] sm:$0x1] %vm66_vm1, %v136_v46 }
 0x174   :  { %v141_v50 = vld [vmem:[#allocation6] sm:$0x1] }
 0x175   :  { %v142_v51 = vmul.f32 0.0625, %v141_v50 }
 0x177   :  { %v147_v52 = vrot.slane %v142_v51, %v146_v49 }
 0x179   :  { %149 = vperm.xlu0 %180, %v147_v52  }
 0x1f4   :  { %v150_v53 = vpop.permute.xlu0 %149 }
 0x1f5   :  { %152 = vst [vmem:[#allocation12] sm:$0xff] %v150_v53 }
 0x1f6   :  { %240 = shalt.err (!%p237_p0)
}
 0x1f7   :  { %162 = dma.vmem_to_hbm [thread:$0]  %s160_s1, 128, %s298_s2, [#allocation9]  }
 0x1f8   :  { %253 = dma.done.wait [#allocation9], 128  }
 0x1f9   :  { %254 = vsyncadd [#allocation9], 4294967168 }
 0x1fa   :  { %166 = vsyncpa [#allocation8], 1 }
 0x1fb   :  { %167 = vsyncpa [#allocation11], 1 }
 0x1fc   :  { %168 = vsyncpa [#allocation9], 1 }

</bundles_post_ra>
